<compile_context>
chip_gen: v7x
topology: tpu7x:2x2x1
jax: 0.10.0
libtpu: 0.0.40
codegen_flags: <defaults>
</compile_context>

<pallas_src>
import jax
import jax.numpy as jnp
from jax import lax
from jax.experimental import pallas as pl
from jax.experimental.pallas import tpu as pltpu

DROPOUT_PROB = 0.5
_KEEP_SCALE = 1.0 / (1.0 - DROPOUT_PROB)                 # inverted-dropout scale
_DROP_THRESHOLD_INT = int(DROPOUT_PROB * (1 << 32))       # keep if hash_bits >= thresh


def _fmix32(x):
    """murmur3 32-bit finalizer (uint32 -> uint32), plain jnp integer ops only."""
    x = x ^ (x >> 16)
    x = x * jnp.uint32(0x85EBCA6B)
    x = x ^ (x >> 13)
    x = x * jnp.uint32(0xC2B2AE35)
    x = x ^ (x >> 16)
    return x


def _dropout_keep(shape, seed_u32, row_offset_u32, salt):
    """Keep-mask for inverted dropout.

    Pure function of (global element index, seed, layer salt) so every batch tile
    gets a distinct mask and the in-kernel and pure-JAX reference masks agree bitwise.
    """
    rows = lax.broadcasted_iota(jnp.int32, shape, 0).astype(jnp.uint32)
    cols = lax.broadcasted_iota(jnp.int32, shape, 1).astype(jnp.uint32)
    elem = (rows + row_offset_u32) * jnp.uint32(shape[1]) + cols
    x = elem ^ (seed_u32 * jnp.uint32(0x9E3779B9))
    x = x + jnp.uint32((salt * 0x632BE59B) & 0xFFFFFFFF)
    return _fmix32(x) >= jnp.uint32(_DROP_THRESHOLD_INT)


def fusionnet_kernel(seed_ref, e1_ref, e2_ref, w1_ref, b1_ref, w2_ref, b2_ref,
                     wo_ref, bo_ref, out_ref):
    tile_b = e1_ref.shape[0]
    seed = seed_ref[0].astype(jnp.uint32)
    row_off = (pl.program_id(0) * tile_b).astype(jnp.uint32)

    # fusion: 'average' -- the 0.5 scale is pre-folded into w1.
    x = e1_ref[...] + e2_ref[...]

    # fc1 -> relu -> MC dropout
    h = jnp.dot(x, w1_ref[...], preferred_element_type=jnp.float32) + b1_ref[...]
    h = jnp.maximum(h, 0.0)
    h = jnp.where(_dropout_keep(h.shape, seed, row_off, 1), h * _KEEP_SCALE, 0.0)

    # fc2 -> relu -> MC dropout
    h2 = jnp.dot(h, w2_ref[...], preferred_element_type=jnp.float32) + b2_ref[...]
    h2 = jnp.maximum(h2, 0.0)
    h2 = jnp.where(_dropout_keep(h2.shape, seed, row_off, 2), h2 * _KEEP_SCALE, 0.0)

    # out projection (hidden -> 1): VPU multiply + cross-lane reduce instead of an
    # N=1 MXU pass; store lane-dense with batch on the lane axis.
    y = jnp.sum(h2 * wo_ref[...], axis=-1) + bo_ref[0]
    out_ref[...] = y[None, None, :].astype(out_ref.dtype)


def prepare_params(w1, b1, w2, b2, wo, bo):
    """One-time parameter prep (outside the hot path).

    - fold the 0.5 'average' fusion scale into fc1's weight
    - biases reshaped to broadcastable rows; output weight to a (1, hidden) lane row
    """
    hidden = w1.shape[1]
    assert wo.shape == (hidden, 1), "only output_dim == 1 is implemented"
    return (w1 * 0.5,
            b1.reshape(1, -1),
            w2,
            b2.reshape(1, -1),
            wo.reshape(1, -1),   # (1, hidden) row vector
            bo.reshape(-1))      # (1,) scalar -> SMEM


def _round_up(x, m):
    return ((x + m - 1) // m) * m


def fusionnet_forward(emb1, emb2, prepared, seed=0):
    """emb1, emb2: [B, input_dim] float32. Returns flat [B] (like .view(-1), output_dim=1)."""
    w1, b1, w2, b2, wo_row, bo = prepared
    B, D = emb1.shape

    # Largest MXU/lane-friendly batch tile up to 512 rows.
    TILE_B = min(512, _round_up(B, 8))
    num_tiles = pl.cdiv(B, TILE_B)
    B_pad = num_tiles * TILE_B
    if B_pad != B:
        pad = ((0, B_pad - B), (0, 0))
        emb1 = jnp.pad(emb1, pad)
        emb2 = jnp.pad(emb2, pad)

    seed_arr = jnp.asarray([seed], dtype=jnp.int32)

    emb_spec = pl.BlockSpec((TILE_B, D), lambda i: (i, 0))
    resident = lambda a: pl.BlockSpec(a.shape, lambda i: (0, 0))   # stays in VMEM
    smem = pl.BlockSpec(memory_space=pltpu.MemorySpace.SMEM)

    out = pl.pallas_call(
        fusionnet_kernel,
        grid=(num_tiles,),
        in_specs=[smem,                    # seed (SMEM scalar)
                  emb_spec, emb_spec,      # emb1, emb2 (batch-tiled, pipelined)
                  resident(w1), resident(b1),
                  resident(w2), resident(b2),
                  resident(wo_row),
                  smem],                   # output bias (SMEM scalar)
        out_specs=pl.BlockSpec((1, 1, TILE_B), lambda i: (i, 0, 0)),
        out_shape=jax.ShapeDtypeStruct((num_tiles, 1, TILE_B), jnp.float32),
        compiler_params=pltpu.CompilerParams(
            dimension_semantics=("parallel",),
            vmem_limit_bytes=32 * 1024 * 1024,
        ),
    )(seed_arr, emb1, emb2, w1, b1, w2, b2, wo_row, bo)

    return out.reshape(-1)[:B]


def fusionnet_reference(emb1, emb2, prepared, seed=0):
    """Pure-JAX reference using the same hash-based dropout masks."""
    w1, b1, w2, b2, wo_row, bo = prepared
    seed_u32 = jnp.uint32(seed)
    x = emb1 + emb2
    h = jnp.maximum(jnp.dot(x, w1, precision=lax.Precision.HIGHEST) + b1, 0.0)
    h = jnp.where(_dropout_keep(h.shape, seed_u32, jnp.uint32(0), 1),
                  h * _KEEP_SCALE, 0.0)
    h2 = jnp.maximum(jnp.dot(h, w2, precision=lax.Precision.HIGHEST) + b2, 0.0)
    h2 = jnp.where(_dropout_keep(h2.shape, seed_u32, jnp.uint32(0), 2),
                   h2 * _KEEP_SCALE, 0.0)
    return jnp.sum(h2 * wo_row, axis=-1) + bo[0]


if __name__ == "__main__":
    key = jax.random.PRNGKey(0)
    B, input_dim, hidden_dim, output_dim = 16, 64, 128, 1

    k1, k2, k3, k4, k5 = jax.random.split(key, 5)

    def xavier_uniform(k, fan_in, fan_out):
        # nn.init.xavier_uniform_: bound = sqrt(6 / (fan_in + fan_out))
        bound = (6.0 / (fan_in + fan_out)) ** 0.5
        return jax.random.uniform(k, (fan_in, fan_out), jnp.float32, -bound, bound)

    w1 = xavier_uniform(k1, input_dim, hidden_dim)
    b1 = jnp.zeros((hidden_dim,), jnp.float32)
    w2 = xavier_uniform(k2, hidden_dim, hidden_dim)
    b2 = jnp.zeros((hidden_dim,), jnp.float32)
    wo = xavier_uniform(k3, hidden_dim, output_dim)
    bo = jnp.zeros((output_dim,), jnp.float32)

    prepared = prepare_params(w1, b1, w2, b2, wo, bo)

    emb1 = jax.random.normal(k4, (B, input_dim), jnp.float32)
    emb2 = jax.random.normal(k5, (B, input_dim), jnp.float32)

    y = fusionnet_forward(emb1, emb2, prepared, seed=0)
    jax.block_until_ready(y)
    assert y.shape == (B * output_dim,)
    assert bool(jnp.all(jnp.isfinite(y)))

    y_ref = fusionnet_reference(emb1, emb2, prepared, seed=0)
    assert bool(jnp.allclose(y, y_ref, rtol=1e-3, atol=2e-3))

    print("KERNEL_OK")
</pallas_src>

<mosaic_0001>
module attributes {stable_mosaic.version = 11 : i64} {
  func.func @fusionnet_kernel(%arg0: i32, %arg1: memref<1xi32, #tpu.memory_space<smem>>, %arg2: memref<16x64xf32, #tpu.memory_space<vmem>>, %arg3: memref<16x64xf32, #tpu.memory_space<vmem>>, %arg4: memref<64x128xf32, #tpu.memory_space<vmem>>, %arg5: memref<1x128xf32, #tpu.memory_space<vmem>>, %arg6: memref<128x128xf32, #tpu.memory_space<vmem>>, %arg7: memref<1x128xf32, #tpu.memory_space<vmem>>, %arg8: memref<1x128xf32, #tpu.memory_space<vmem>>, %arg9: memref<1xf32, #tpu.memory_space<smem>>, %arg10: memref<1x1x16xf32, #tpu.memory_space<vmem>>) attributes {dimension_semantics = [#tpu.dimension_semantics<parallel>], iteration_bounds = array<i64: 1>, scalar_prefetch = 0 : i64, scratch_operands = 0 : i64, tpu.core_type = #tpu.core_type<tc>, window_params = [{transform_indices = @transform_0, window_bounds = array<i64: 1>}, {transform_indices = @transform_1, window_bounds = array<i64: 16, 64>}, {transform_indices = @transform_2, window_bounds = array<i64: 16, 64>}, {pipeline_mode = #tpu.pipeline_mode<synchronous>, transform_indices = @transform_3, window_bounds = array<i64: 64, 128>}, {pipeline_mode = #tpu.pipeline_mode<synchronous>, transform_indices = @transform_4, window_bounds = array<i64: 1, 128>}, {pipeline_mode = #tpu.pipeline_mode<synchronous>, transform_indices = @transform_5, window_bounds = array<i64: 128, 128>}, {pipeline_mode = #tpu.pipeline_mode<synchronous>, transform_indices = @transform_6, window_bounds = array<i64: 1, 128>}, {pipeline_mode = #tpu.pipeline_mode<synchronous>, transform_indices = @transform_7, window_bounds = array<i64: 1, 128>}, {transform_indices = @transform_8, window_bounds = array<i64: 1>}, {transform_indices = @transform_9, window_bounds = array<i64: 1, 1, 16>}]} {
    %c0 = arith.constant 0 : index
    %0 = memref.load %arg1[%c0] : memref<1xi32, #tpu.memory_space<smem>>
    %c16_i32 = arith.constant 16 : i32
    %1 = arith.muli %arg0, %c16_i32 : i32
    %c0_0 = arith.constant 0 : index
    %c0_1 = arith.constant 0 : index
    %2 = vector.load %arg2[%c0_0, %c0_1] : memref<16x64xf32, #tpu.memory_space<vmem>>, vector<16x64xf32>
    %c0_2 = arith.constant 0 : index
    %c0_3 = arith.constant 0 : index
    %3 = vector.load %arg3[%c0_2, %c0_3] : memref<16x64xf32, #tpu.memory_space<vmem>>, vector<16x64xf32>
    %4 = arith.addf %2, %3 : vector<16x64xf32>
    %c0_4 = arith.constant 0 : index
    %c0_5 = arith.constant 0 : index
    %5 = vector.load %arg4[%c0_4, %c0_5] : memref<64x128xf32, #tpu.memory_space<vmem>>, vector<64x128xf32>
    %cst = arith.constant dense<0.000000e+00> : vector<16x128xf32>
    %6 = tpu.matmul %4, %5, %cst {dimension_numbers = #tpu.dot_dimension_numbers<[1], [0], [0], [1], [0, 0, 1, 1], [], []>} : vector<16x64xf32>, vector<64x128xf32>, vector<16x128xf32> -> vector<16x128xf32>
    %c0_6 = arith.constant 0 : index
    %c0_7 = arith.constant 0 : index
    %7 = vector.load %arg5[%c0_6, %c0_7] : memref<1x128xf32, #tpu.memory_space<vmem>>, vector<1x128xf32>
    %8 = vector.broadcast %7 : vector<1x128xf32> to vector<16x128xf32>
    %9 = arith.addf %6, %8 : vector<16x128xf32>
    %cst_8 = arith.constant 0.000000e+00 : f32
    %10 = vector.broadcast %cst_8 : f32 to vector<16x128xf32>
    %11 = arith.maximumf %9, %10 : vector<16x128xf32>
    %12 = tpu.iota {dimensions = array<i32: 0>} : vector<16x128xi32>
    %13 = tpu.iota {dimensions = array<i32: 1>} : vector<16x128xi32>
    %14 = vector.broadcast %1 : i32 to vector<16x128xi32>
    %15 = arith.addi %12, %14 : vector<16x128xi32>
    %c128_i32 = arith.constant 128 : i32
    %16 = vector.broadcast %c128_i32 : i32 to vector<16x128xi32>
    %17 = arith.muli %15, %16 : vector<16x128xi32>
    %18 = arith.addi %17, %13 : vector<16x128xi32>
    %c-1640531527_i32 = arith.constant -1640531527 : i32
    %19 = arith.muli %0, %c-1640531527_i32 : i32
    %20 = vector.broadcast %19 : i32 to vector<16x128xi32>
    %21 = arith.xori %18, %20 : vector<16x128xi32>
    %c1663821211_i32 = arith.constant 1663821211 : i32
    %22 = vector.broadcast %c1663821211_i32 : i32 to vector<16x128xi32>
    %23 = arith.addi %21, %22 : vector<16x128xi32>
    %c16_i32_9 = arith.constant 16 : i32
    %24 = vector.broadcast %c16_i32_9 : i32 to vector<16x128xi32>
    %25 = arith.shrui %23, %24 : vector<16x128xi32>
    %26 = arith.xori %23, %25 : vector<16x128xi32>
    %c-2048144789_i32 = arith.constant -2048144789 : i32
    %27 = vector.broadcast %c-2048144789_i32 : i32 to vector<16x128xi32>
    %28 = arith.muli %26, %27 : vector<16x128xi32>
    %c13_i32 = arith.constant 13 : i32
    %29 = vector.broadcast %c13_i32 : i32 to vector<16x128xi32>
    %30 = arith.shrui %28, %29 : vector<16x128xi32>
    %31 = arith.xori %28, %30 : vector<16x128xi32>
    %c-1028477387_i32 = arith.constant -1028477387 : i32
    %32 = vector.broadcast %c-1028477387_i32 : i32 to vector<16x128xi32>
    %33 = arith.muli %31, %32 : vector<16x128xi32>
    %c16_i32_10 = arith.constant 16 : i32
    %34 = vector.broadcast %c16_i32_10 : i32 to vector<16x128xi32>
    %35 = arith.shrui %33, %34 : vector<16x128xi32>
    %36 = arith.xori %33, %35 : vector<16x128xi32>
    %c-2147483648_i32 = arith.constant -2147483648 : i32
    %37 = vector.broadcast %c-2147483648_i32 : i32 to vector<16x128xi32>
    %38 = arith.cmpi uge, %36, %37 : vector<16x128xi32>
    %cst_11 = arith.constant 2.000000e+00 : f32
    %39 = vector.broadcast %cst_11 : f32 to vector<16x128xf32>
    %40 = arith.mulf %11, %39 : vector<16x128xf32>
    %cst_12 = arith.constant 0.000000e+00 : f32
    %41 = vector.broadcast %cst_12 : f32 to vector<16x128xf32>
    %42 = arith.select %38, %40, %41 : vector<16x128xi1>, vector<16x128xf32>
    %c0_13 = arith.constant 0 : index
    %c0_14 = arith.constant 0 : index
    %43 = vector.load %arg6[%c0_13, %c0_14] : memref<128x128xf32, #tpu.memory_space<vmem>>, vector<128x128xf32>
    %cst_15 = arith.constant dense<0.000000e+00> : vector<16x128xf32>
    %44 = tpu.matmul %42, %43, %cst_15 {dimension_numbers = #tpu.dot_dimension_numbers<[1], [0], [0], [1], [0, 0, 1, 1], [], []>} : vector<16x128xf32>, vector<128x128xf32>, vector<16x128xf32> -> vector<16x128xf32>
    %c0_16 = arith.constant 0 : index
    %c0_17 = arith.constant 0 : index
    %45 = vector.load %arg7[%c0_16, %c0_17] : memref<1x128xf32, #tpu.memory_space<vmem>>, vector<1x128xf32>
    %46 = vector.broadcast %45 : vector<1x128xf32> to vector<16x128xf32>
    %47 = arith.addf %44, %46 : vector<16x128xf32>
    %cst_18 = arith.constant 0.000000e+00 : f32
    %48 = vector.broadcast %cst_18 : f32 to vector<16x128xf32>
    %49 = arith.maximumf %47, %48 : vector<16x128xf32>
    %50 = tpu.iota {dimensions = array<i32: 0>} : vector<16x128xi32>
    %51 = tpu.iota {dimensions = array<i32: 1>} : vector<16x128xi32>
    %52 = vector.broadcast %1 : i32 to vector<16x128xi32>
    %53 = arith.addi %50, %52 : vector<16x128xi32>
    %c128_i32_19 = arith.constant 128 : i32
    %54 = vector.broadcast %c128_i32_19 : i32 to vector<16x128xi32>
    %55 = arith.muli %53, %54 : vector<16x128xi32>
    %56 = arith.addi %55, %51 : vector<16x128xi32>
    %c-1640531527_i32_20 = arith.constant -1640531527 : i32
    %57 = arith.muli %0, %c-1640531527_i32_20 : i32
    %58 = vector.broadcast %57 : i32 to vector<16x128xi32>
    %59 = arith.xori %56, %58 : vector<16x128xi32>
    %c-967324874_i32 = arith.constant -967324874 : i32
    %60 = vector.broadcast %c-967324874_i32 : i32 to vector<16x128xi32>
    %61 = arith.addi %59, %60 : vector<16x128xi32>
    %c16_i32_21 = arith.constant 16 : i32
    %62 = vector.broadcast %c16_i32_21 : i32 to vector<16x128xi32>
    %63 = arith.shrui %61, %62 : vector<16x128xi32>
    %64 = arith.xori %61, %63 : vector<16x128xi32>
    %c-2048144789_i32_22 = arith.constant -2048144789 : i32
    %65 = vector.broadcast %c-2048144789_i32_22 : i32 to vector<16x128xi32>
    %66 = arith.muli %64, %65 : vector<16x128xi32>
    %c13_i32_23 = arith.constant 13 : i32
    %67 = vector.broadcast %c13_i32_23 : i32 to vector<16x128xi32>
    %68 = arith.shrui %66, %67 : vector<16x128xi32>
    %69 = arith.xori %66, %68 : vector<16x128xi32>
    %c-1028477387_i32_24 = arith.constant -1028477387 : i32
    %70 = vector.broadcast %c-1028477387_i32_24 : i32 to vector<16x128xi32>
    %71 = arith.muli %69, %70 : vector<16x128xi32>
    %c16_i32_25 = arith.constant 16 : i32
    %72 = vector.broadcast %c16_i32_25 : i32 to vector<16x128xi32>
    %73 = arith.shrui %71, %72 : vector<16x128xi32>
    %74 = arith.xori %71, %73 : vector<16x128xi32>
    %c-2147483648_i32_26 = arith.constant -2147483648 : i32
    %75 = vector.broadcast %c-2147483648_i32_26 : i32 to vector<16x128xi32>
    %76 = arith.cmpi uge, %74, %75 : vector<16x128xi32>
    %cst_27 = arith.constant 2.000000e+00 : f32
    %77 = vector.broadcast %cst_27 : f32 to vector<16x128xf32>
    %78 = arith.mulf %49, %77 : vector<16x128xf32>
    %cst_28 = arith.constant 0.000000e+00 : f32
    %79 = vector.broadcast %cst_28 : f32 to vector<16x128xf32>
    %80 = arith.select %76, %78, %79 : vector<16x128xi1>, vector<16x128xf32>
    %c0_29 = arith.constant 0 : index
    %c0_30 = arith.constant 0 : index
    %81 = vector.load %arg8[%c0_29, %c0_30] : memref<1x128xf32, #tpu.memory_space<vmem>>, vector<1x128xf32>
    %82 = vector.broadcast %81 : vector<1x128xf32> to vector<16x128xf32>
    %83 = arith.mulf %80, %82 : vector<16x128xf32>
    %cst_31 = arith.constant dense<0.000000e+00> : vector<16xf32>
    %84 = vector.multi_reduction <add>, %83, %cst_31 [1] : vector<16x128xf32> to vector<16xf32>
    %c0_32 = arith.constant 0 : index
    %85 = memref.load %arg9[%c0_32] : memref<1xf32, #tpu.memory_space<smem>>
    %86 = vector.broadcast %85 : f32 to vector<16xf32>
    %87 = arith.addf %84, %86 : vector<16xf32>
    %88 = vector.shape_cast %87 : vector<16xf32> to vector<1x1x16xf32>
    %c0_33 = arith.constant 0 : index
    %c0_34 = arith.constant 0 : index
    %c0_35 = arith.constant 0 : index
    %89 = vector.load %arg10[%c0_33, %c0_34, %c0_35] : memref<1x1x16xf32, #tpu.memory_space<vmem>>, vector<1x1x16xf32>
    tpu.vector_store %arg10[%c0_33, %c0_34, %c0_35], %88 {strides = array<i32>} : memref<1x1x16xf32, #tpu.memory_space<vmem>>, vector<1x1x16xf32>,
    return
  }
  func.func @transform_0(%arg0: i32) -> i32 {
    %c0_i32 = arith.constant 0 : i32
    %c0_i32_0 = arith.constant 0 : i32
    return %c0_i32 : i32
  }
  func.func @transform_1(%arg0: i32) -> (i32, i32) {
    %c0_i32 = arith.constant 0 : i32
    %c0_i32_0 = arith.constant 0 : i32
    return %arg0, %c0_i32 : i32, i32
  }
  func.func @transform_2(%arg0: i32) -> (i32, i32) {
    %c0_i32 = arith.constant 0 : i32
    %c0_i32_0 = arith.constant 0 : i32
    return %arg0, %c0_i32 : i32, i32
  }
  func.func @transform_3(%arg0: i32) -> (i32, i32) {
    %c0_i32 = arith.constant 0 : i32
    %c0_i32_0 = arith.constant 0 : i32
    %c0_i32_1 = arith.constant 0 : i32
    return %c0_i32, %c0_i32_0 : i32, i32
  }
  func.func @transform_4(%arg0: i32) -> (i32, i32) {
    %c0_i32 = arith.constant 0 : i32
    %c0_i32_0 = arith.constant 0 : i32
    %c0_i32_1 = arith.constant 0 : i32
    return %c0_i32, %c0_i32_0 : i32, i32
  }
  func.func @transform_5(%arg0: i32) -> (i32, i32) {
    %c0_i32 = arith.constant 0 : i32
    %c0_i32_0 = arith.constant 0 : i32
    %c0_i32_1 = arith.constant 0 : i32
    return %c0_i32, %c0_i32_0 : i32, i32
  }
  func.func @transform_6(%arg0: i32) -> (i32, i32) {
    %c0_i32 = arith.constant 0 : i32
    %c0_i32_0 = arith.constant 0 : i32
    %c0_i32_1 = arith.constant 0 : i32
    return %c0_i32, %c0_i32_0 : i32, i32
  }
  func.func @transform_7(%arg0: i32) -> (i32, i32) {
    %c0_i32 = arith.constant 0 : i32
    %c0_i32_0 = arith.constant 0 : i32
    %c0_i32_1 = arith.constant 0 : i32
    return %c0_i32, %c0_i32_0 : i32, i32
  }
  func.func @transform_8(%arg0: i32) -> i32 {
    %c0_i32 = arith.constant 0 : i32
    %c0_i32_0 = arith.constant 0 : i32
    return %c0_i32 : i32
  }
  func.func @transform_9(%arg0: i32) -> (i32, i32, i32) {
    %c0_i32 = arith.constant 0 : i32
    %c0_i32_0 = arith.constant 0 : i32
    %c0_i32_1 = arith.constant 0 : i32
    return %arg0, %c0_i32, %c0_i32_0 : i32, i32, i32
  }
}

</mosaic_0001>

<bundles_post_ra>
// kernel: tpu_custom_call.1
= control target key start
LH: loop header
LB: loop body
LE: loop exit
PB: predicated region body
PF: predicated region fallthrough
CT: control target
= control target key end

     0   :  { %16 = vsyncpa [#allocation5], 0  ;;  %s845_s0 = inlined_call_operand.<no memory space> [shape: s32[1], index: 0, kind: input, shape index: {}]   ;;  %s846_s1 = inlined_call_operand.hbm [shape: f32[16,64], index: 1, kind: input, shape index: {}]   ;;  %s847_s2 = inlined_call_operand.hbm [shape: f32[16,64], index: 2, kind: input, shape index: {}]   ;;  %s848_s3 = inlined_call_operand.hbm [shape: f32[64,128], index: 3, kind: input, shape index: {}]   ;;  %s849_s4 = inlined_call_operand.vmem [shape: f32[1,128], index: 4, kind: input, shape index: {}]   ;;  %s850_s5 = inlined_call_operand.hbm [shape: f32[128,128], index: 5, kind: input, shape index: {}]   ;;  %s851_s6 = inlined_call_operand.vmem [shape: f32[1,128], index: 6, kind: input, shape index: {}]   ;;  %s852_s7 = inlined_call_operand.vmem [shape: f32[1,128], index: 7, kind: input, shape index: {}]   ;;  %s853_s8 = inlined_call_operand.<no memory space> [shape: f32[1], index: 8, kind: input, shape index: {}]   ;;  %s854_s9 = inlined_call_operand.hbm [shape: f32[1,1,16], index: 9, kind: output, shape index: {}]  }
   0x1   :  { %17 = vsyncpa [#allocation8], 0 }
   0x2   :  { %18 = vsyncpa [#allocation11], 0 }
   0x3   :  { %19 = vsyncpa [#allocation6], 0  ;;  %s673_s30 = smov [#allocation7]   ;;  %s674_s11 = smov [#allocation4]  }
   0x4   :  { %s39_s10 = sshll.u32 %s673_s30, 4  ;;  %s27_s12 = sshll.u32 %s674_s11, 4  ;;  %s40_s10 = int_to_ptr.vmem [resolvable:$true] %s39_s10  ;;  %s730_s12 = int_to_ptr.vmem [resolvable:$true] %s27_s12 }
   0x5   :  { %s555_s15 = scalar_lea.hbm %s847_s2, 256 }
   0x6   :  { %p556_p0 = scmp.ne.s32.totalorder %s847_s2, %s555_s15  ;;  %p559_p1 = scmp.lt.u32.totalorder %s555_s15, %s847_s2 }
   0x8   :  { %p561_p2 = pnand %p559_p1, %p556_p0 }
   0xa   :  { %564 = shalt.err (!%p561_p2)
}
   0xb   :  { %s565_s20 = scalar_lea.vmem %s40_s10, 256  ;;  %p570_p4 = scmp.lt.s32.totalorder %s40_s10, %s40_s10 }
   0xc   :  { %p566_p3 = scmp.ne.s32.totalorder %s40_s10, %s565_s20  ;;  %p571_p5 = scmp.lt.s32.totalorder %s565_s20, %s565_s20 }
   0xe   :  { %p572_p6 = por %p571_p5, %p570_p4 }
  0x10   :  { %p573_p7 = pnand %p572_p6, %p566_p3 }
  0x12   :  { %576 = shalt.err (!%p573_p7)
}
  0x13   :  { %s675_s21 = smov 128   ;;  %s676_s22 = smov 8  }
  0x14   :  { %45 = dma.hbm_to_vmem [thread:$0]  %s847_s2, 256, %s40_s10, [#allocation8], %s675_s21, %s675_s21, %s676_s22  }
  0x15   :  { %s577_s27 = scalar_lea.hbm %s846_s1, 256 }
  0x16   :  { %p578_p8 = scmp.ne.s32.totalorder %s846_s1, %s577_s27  ;;  %p581_p9 = scmp.lt.u32.totalorder %s577_s27, %s846_s1 }
  0x18   :  { %p583_p10 = pnand %p581_p9, %p578_p8 }
  0x1a   :  { %586 = shalt.err (!%p583_p10)
}
  0x1b   :  { %s587_s13 = scalar_lea.vmem %s730_s12, 256  ;;  %p592_p12 = scmp.lt.s32.totalorder %s730_s12, %s730_s12 }
  0x1c   :  { %p588_p11 = scmp.ne.s32.totalorder %s730_s12, %s587_s13  ;;  %p593_p13 = scmp.lt.s32.totalorder %s587_s13, %s587_s13 }
  0x1e   :  { %p594_p0 = por %p593_p13, %p592_p12 }
  0x20   :  { %p595_p1 = pnand %p594_p0, %p588_p11 }
  0x22   :  { %598 = shalt.err (!%p595_p1)
}
  0x23   :  { %33 = dma.hbm_to_vmem [thread:$0]  %s846_s1, 256, %s730_s12, [#allocation5], %s675_s21, %s675_s21, %s676_s22  }
  0x24   :  { %s677_s14 = smov [#allocation9]   ;;  %s678_s16 = smov [#allocation10]  }
  0x25   :  { %s51_s15 = sshll.u32 %s677_s14, 4  ;;  %s65_s17 = sshll.u32 %s678_s16, 4  ;;  %s52_s15 = int_to_ptr.vmem [resolvable:$true] %s51_s15  ;;  %s767_s17 = int_to_ptr.vmem [resolvable:$true] %s65_s17 }
  0x26   :  { %s599_s20 = scalar_lea.hbm %s848_s3, 1024 }
  0x27   :  { %p600_p2 = scmp.ne.s32.totalorder %s848_s3, %s599_s20  ;;  %p603_p3 = scmp.lt.u32.totalorder %s599_s20, %s848_s3 }
  0x29   :  { %p605_p4 = pnand %p603_p3, %p600_p2 }
  0x2b   :  { %608 = shalt.err (!%p605_p4)
}
  0x2c   :  { %s609_s1 = scalar_lea.vmem %s52_s15, 1024  ;;  %p614_p6 = scmp.lt.s32.totalorder %s52_s15, %s52_s15 }
  0x2d   :  { %p610_p5 = scmp.ne.s32.totalorder %s52_s15, %s609_s1  ;;  %p615_p7 = scmp.lt.s32.totalorder %s609_s1, %s609_s1 }
  0x2f   :  { %p616_p8 = por %p615_p7, %p614_p6 }
  0x31   :  { %p617_p9 = pnand %p616_p8, %p610_p5 }
  0x33   :  { %620 = shalt.err (!%p617_p9)
}
  0x34   :  { %57 = dma.hbm_to_vmem [thread:$0]  %s848_s3, 1024, %s52_s15, [#allocation8], %s675_s21, %s675_s21, %s676_s22  }
  0x35   :  { %s621_s30 = scalar_lea.hbm %s850_s5, 2048 }
  0x36   :  { %p622_p10 = scmp.ne.s32.totalorder %s850_s5, %s621_s30  ;;  %p625_p11 = scmp.lt.u32.totalorder %s621_s30, %s850_s5 }
  0x38   :  { %p627_p12 = pnand %p625_p11, %p622_p10 }
  0x3a   :  { %630 = shalt.err (!%p627_p12)
}
  0x3b   :  { %s631_s14 = scalar_lea.vmem %s767_s17, 2048  ;;  %p636_p0 = scmp.lt.s32.totalorder %s767_s17, %s767_s17 }
  0x3c   :  { %p632_p13 = scmp.ne.s32.totalorder %s767_s17, %s631_s14  ;;  %p637_p1 = scmp.lt.s32.totalorder %s631_s14, %s631_s14 }
  0x3e   :  { %p638_p2 = por %p637_p1, %p636_p0 }
  0x40   :  { %p639_p3 = pnand %p638_p2, %p632_p13 }
  0x42   :  { %642 = shalt.err (!%p639_p3)
}
  0x43   :  { %71 = dma.hbm_to_vmem [thread:$0]  %s850_s5, 2048, %s767_s17, [#allocation11], %s675_s21, %s675_s21, %s676_s22  }
  0x44   :  { %665 = dma.done.wait [#allocation5], 256  }
  0x45   :  { %666 = vsyncadd [#allocation5], 4294967040 }
  0x46   :  { %667 = dma.done.wait [#allocation8], 1280  }
  0x47   :  { %668 = vsyncadd [#allocation8], 4294966016 }
  0x48   :  { %669 = dma.done.wait [#allocation11], 2048  }
  0x49   :  { %670 = vsyncadd [#allocation11], 4294965248  ;;  %v98_v0 = vld [vmem:[#allocation9] sm:$0xff]  ;;  %v99_v1 = vld [vmem:[#allocation9 + $0x8] sm:$0xff]  ;;  %vm113_vm0 = vcmask 523264   ;;  %v197_v42 = vlaneseq  ;;  %vm389_vm5 = vcmask 130112  }
  0x4a   :  { %v100_v2 = vld [vmem:[#allocation9 + $0x10] sm:$0xff]  ;;  %v500_v3 = vpack.c.bf16 %v99_v1, %v98_v0  ;;  %v101_v4 = vld [vmem:[#allocation9 + $0x18] sm:$0xff]  ;;  %v102_v6 = vld [vmem:[#allocation9 + $0x20] sm:$0xff]  ;;  %s209_s22 = smul.u32 2654435769, %s845_s0  ;;  %vm392_vm6 = vcmask 122880  }
  0x4b   :  { %v504_v5 = vpack.c.bf16 %v101_v4, %v100_v2  ;;  %v103_v7 = vld [vmem:[#allocation9 + $0x28] sm:$0xff]  ;;  %v92_v8 = vld [vmem:[#allocation4] sm:$0xff]  ;;  %v94_v9 = vld [vmem:[#allocation7] sm:$0xff]  ;;  %v806_v43 = vshrl.u32 %v197_v42, 7  ;;  %v809_v45 = vand.u32 127, %v197_v42 }
  0x4c   :  { %501 = vmatprep.subr.bf16.mxu0 %v500_v3  ;;  %v96_v10 = vadd.f32 %v94_v9, %v92_v8  ;;  %v237_v11 = vld [vmem:[#allocation10] sm:$0xff]  ;;  %v238_v12 = vld [vmem:[#allocation10 + $0x8] sm:$0xff]  ;;  %v239_v13 = vld [vmem:[#allocation10 + $0x10] sm:$0xff]  ;;  %v508_v14 = vpack.c.bf16 %v103_v7, %v102_v6  ;;  %v210_v50 = vstv %s209_s22 }
  0x4d   :  { %503 = vmatpush3.bf16.msra.mxu0 %v500_v3  ;;  %v104_v15 = vld [vmem:[#allocation9 + $0x30] sm:$0xff]  ;;  %v516_v16 = vpack.c.bf16 %v238_v12, %v237_v11  ;;  %v240_v17 = vld [vmem:[#allocation10 + $0x18] sm:$0xff]  ;;  %v241_v20 = vld [vmem:[#allocation10 + $0x20] sm:$0xff]  ;;  %v199_v44 = vadd.s32 8, %v806_v43  ;;  %v205_v46 = vmul.u32 128, %v806_v43 }
  0x4e   :  { %505 = vmatprep.subr.bf16.mxu0 %v504_v5  ;;  %v105_v18 = vld [vmem:[#allocation9 + $0x38] sm:$0xff]  ;;  %462 = vmatprep.mubr.msk.f32.mxu0 %vm113_vm0, %v96_v10  ;;  %v520_v19 = vpack.c.bf16 %v240_v17, %v239_v13  ;;  %v242_v21 = vld [vmem:[#allocation10 + $0x28] sm:$0xff]  ;;  %v243_v24 = vld [vmem:[#allocation10 + $0x30] sm:$0xff] }
  0x4f   :  { %517 = vmatprep.subr.bf16.mxu1 %v516_v16  ;;  %v512_v22 = vpack.c.bf16 %v105_v18, %v104_v15  ;;  %v524_v23 = vpack.c.bf16 %v242_v21, %v241_v20  ;;  %v244_v25 = vld [vmem:[#allocation10 + $0x38] sm:$0xff]  ;;  %v93_v26 = vld [vmem:[#allocation4 + $0x8] sm:$0xff]  ;;  %v245_v29 = vld [vmem:[#allocation10 + $0x40] sm:$0xff]  ;;  %v206_v47 = vmul.u32 128, %v199_v44  ;;  %v207_v48 = vadd.s32 %v205_v46, %v809_v45 }
  0x50   :  { %519 = vmatpush3.bf16.msra.mxu1 %v516_v16  ;;  %v95_v27 = vld [vmem:[#allocation7 + $0x8] sm:$0xff]  ;;  %v528_v28 = vpack.c.bf16 %v244_v25, %v243_v24  ;;  %v246_v30 = vld [vmem:[#allocation10 + $0x48] sm:$0xff]  ;;  %v247_v33 = vld [vmem:[#allocation10 + $0x50] sm:$0xff] }
  0x51   :  { %507 = vmatpush3.bf16.msra.mxu0 %v504_v5  ;;  %521 = vmatprep.subr.bf16.mxu1 %v520_v19  ;;  %v97_v31 = vadd.f32 %v95_v27, %v93_v26  ;;  %v532_v32 = vpack.c.bf16 %v246_v30, %v245_v29  ;;  %v248_v34 = vld [vmem:[#allocation10 + $0x58] sm:$0xff]  ;;  %v249_v36 = vld [vmem:[#allocation10 + $0x60] sm:$0xff]  ;;  %v250_v37 = vld [vmem:[#allocation10 + $0x68] sm:$0xff]  ;;  %v208_v49 = vadd.s32 %v206_v47, %v809_v45 }
  0x52   :  { %509 = vmatprep.subr.bf16.mxu0 %v508_v14  ;;  %v536_v35 = vpack.c.bf16 %v248_v34, %v247_v33  ;;  %v540_v38 = vpack.c.bf16 %v250_v37, %v249_v36  ;;  %v251_v39 = vld [vmem:[#allocation10 + $0x70] sm:$0xff]  ;;  %v252_v40 = vld [vmem:[#allocation10 + $0x78] sm:$0xff]  ;;  %v211_v51 = vxor.u32 %v210_v50, %v207_v48  ;;  %v411_v4 = vld [vmem:[%s849_s4] ss:$0 sm:$0xff] }
  0x53   :  { %v544_v41 = vpack.c.bf16 %v252_v40, %v251_v39  ;;  %v212_v52 = vxor.u32 %v210_v50, %v208_v49  ;;  %v417_v44 = vld [vmem:[%s852_s7] ss:$0 sm:$0xff]  ;;  %v384_v50 = vadd.s32 4294967288, %v809_v45  ;;  %s679_s7 = smov [#allocation12]  }
  0x54   :  { %523 = vmatpush3.bf16.msra.mxu1 %v520_v19  ;;  %v213_v53 = vadd.s32 1663821211, %v211_v51  ;;  %v337_v16 = vadd.s32 3327642422, %v211_v51  ;;  %v375_v51 = vstv %s853_s8  ;;  %s400_s23 = sshll.u32 %s679_s7, 4  ;;  %s401_s23 = int_to_ptr.vmem [resolvable:$true] %s400_s23 }
  0x55   :  { %511 = vmatpush3.bf16.msra.mxu0 %v508_v14  ;;  %525 = vmatprep.subr.bf16.mxu1 %v524_v23  ;;  %v214_v54 = vadd.s32 1663821211, %v212_v52  ;;  %v338_v17 = vadd.s32 3327642422, %v212_v52  ;;  %s643_s24 = scalar_lea.vmem %s401_s23, 16  ;;  %s647_s8 = scalar_lea.vmem %s401_s23, 32 }
  0x56   :  { %513 = vmatprep.subr.bf16.mxu0 %v512_v22  ;;  %v215_v55 = vshrl.u32 %v213_v53, 16  ;;  %v339_v18 = vshrl.u32 %v337_v16, 16  ;;  %p644_p4 = scmp.ne.s32.totalorder %s401_s23, %s643_s24  ;;  %p648_p5 = scmp.lt.s32.totalorder %s401_s23, %s401_s23 }
  0x57   :  { %v216_v56 = vshrl.u32 %v214_v54, 16  ;;  %v340_v19 = vshrl.u32 %v338_v17, 16  ;;  %p649_p6 = scmp.lt.s32.totalorder %s647_s8, %s643_s24 }
  0x58   :  { %527 = vmatpush3.bf16.msra.mxu1 %v524_v23  ;;  %v217_v57 = vxor.u32 %v215_v55, %v213_v53  ;;  %v341_v20 = vxor.u32 %v339_v18, %v337_v16  ;;  %v382_v53 = vsub.s32 %v809_v45, %v806_v43  ;;  %v387_v55 = vsub.s32 %v384_v50, %v806_v43 }
  0x59   :  { %515 = vmatpush3.bf16.msra.mxu0 %v512_v22  ;;  %529 = vmatprep.subr.bf16.mxu1 %v528_v28  ;;  %v218_v58 = vxor.u32 %v216_v56, %v214_v54  ;;  %v342_v21 = vxor.u32 %v340_v19, %v338_v17  ;;  %p650_p7 = por %p649_p6, %p648_p5 }
  0x5a   :  { %v219_v59 = vmul.u32 2246822507, %v217_v57  ;;  %v343_v22 = vmul.u32 2246822507, %v341_v20 }
  0x5b   :  { %v220_v60 = vmul.u32 2246822507, %v218_v58  ;;  %v344_v23 = vmul.u32 2246822507, %v342_v21  ;;  %p651_p8 = pnand %p650_p7, %p644_p4 }
  0x5c   :  { %463 = vmatmul.mubr.msk.f32.vlgmr.msra.gmra.mrb[0].mxu0 %vm113_vm0, %v97_v31  ;;  %531 = vmatpush3.bf16.msra.mxu1 %v528_v28  ;;  %v221_v61 = vshrl.u32 %v219_v59, 13  ;;  %v345_v24 = vshrl.u32 %v343_v22, 13  ;;  %v414_v31 = vld [vmem:[%s851_s6] ss:$0 sm:$0xff] }
  0x5d   :  { %533 = vmatprep.subr.bf16.mxu1 %v532_v32  ;;  %v222_v62 = vshrl.u32 %v220_v60, 13  ;;  %v346_v25 = vshrl.u32 %v344_v23, 13 }
  0x5e   :  { %v223_v63 = vxor.u32 %v221_v61, %v219_v59  ;;  %v347_v26 = vxor.u32 %v345_v24, %v343_v22 }
  0x5f   :  { %v224_v0 = vxor.u32 %v222_v62, %v220_v60  ;;  %v348_v27 = vxor.u32 %v346_v25, %v344_v23 }
  0x60   :  { %535 = vmatpush3.bf16.msra.mxu1 %v532_v32  ;;  %v225_v1 = vmul.u32 3266489909, %v223_v63  ;;  %v349_v28 = vmul.u32 3266489909, %v347_v26 }
  0x61   :  { %537 = vmatprep.subr.bf16.mxu1 %v536_v35  ;;  %v226_v2 = vmul.u32 3266489909, %v224_v0  ;;  %v350_v29 = vmul.u32 3266489909, %v348_v27 }
  0x62   :  { %v227_v3 = vshrl.u32 %v225_v1, 16  ;;  %v351_v30 = vshrl.u32 %v349_v28, 16 }
  0x63   :  { %v228_v5 = vshrl.u32 %v226_v2, 16  ;;  %v352_v32 = vshrl.u32 %v350_v29, 16 }
  0x64   :  { %539 = vmatpush3.bf16.msra.mxu1 %v536_v35  ;;  %v229_v9 = vxor.u32 %v227_v3, %v225_v1  ;;  %v353_v36 = vxor.u32 %v351_v30, %v349_v28 }
  0x65   :  { %541 = vmatprep.subr.bf16.mxu1 %v540_v38  ;;  %v230_v11 = vxor.u32 %v228_v5, %v226_v2  ;;  %v354_v39 = vxor.u32 %v352_v32, %v350_v29 }
  0x66   :  { %vm231_vm1 = vcmp.ge.u32.totalorder %v229_v9, 2147483648  ;;  %vm355_vm3 = vcmp.ge.u32.totalorder %v353_v36, 2147483648 }
  0x67   :  { %vm232_vm2 = vcmp.ge.u32.totalorder %v230_v11, 2147483648  ;;  %vm356_vm4 = vcmp.ge.u32.totalorder %v354_v39, 2147483648 }
  0x68   :  { %543 = vmatpush3.bf16.msra.mxu1 %v540_v38 }
  0x69   :  { %545 = vmatprep.subr.bf16.mxu1 %v544_v41 }
  0x6c   :  { %547 = vmatpush3.bf16.msra.mxu1 %v544_v41 }
 0x12f   :  { %v464_v6 = vpop.f32.mrb[0].mxu0 }
 0x130   :  { %v192_v7 = vadd.f32 %v464_v6, %v411_v4  ;;  %v186_v8 = vpop.f32.mrb[1].mxu0 }
 0x131   :  { %v187_v10 = vadd.f32 %v411_v4, %v186_v8 }
 0x132   :  { %v196_v12 = vmax.f32 %v192_v7, 0.0 }
 0x133   :  { %v195_v13 = vmax.f32 %v187_v10, 0.0 }
 0x134   :  { %v234_v15 = vmul.f32 2.0, %v196_v12 }
 0x135   :  { %v233_v14 = vmul.f32 2.0, %v195_v13 }
 0x137   :  { %497 = vmatprep.mubr.msk.f32.mxu1 %vm231_vm1, %v233_v14 }
 0x138   :  { %498 = vmatmul.mubr.msk.f32.vlgmr.msra.gmra.mrb[0].mxu1 %vm232_vm2, %v234_v15 }
 0x20b   :  { %v499_v33 = vpop.f32.mrb[0].mxu1 }
 0x20c   :  { %v332_v34 = vadd.f32 %v499_v33, %v414_v31  ;;  %v326_v35 = vpop.f32.mrb[1].mxu1 }
 0x20d   :  { %v327_v37 = vadd.f32 %v414_v31, %v326_v35 }
 0x20e   :  { %v336_v38 = vmax.f32 %v332_v34, 0.0 }
 0x20f   :  { %v335_v40 = vmax.f32 %v327_v37, 0.0 }
 0x210   :  { %v358_v41 = vmul.f32 2.0, %v336_v38 }
 0x211   :  { %v357_v42 = vmul.f32 2.0, %v335_v40 }
 0x212   :  { %v360_v48 = vsel %vm356_vm4, %v358_v41, 0.0 }
 0x213   :  { %v359_v46 = vsel %vm355_vm3, %v357_v42, 0.0  ;;  %v369_v49 = vmul.f32 %v417_v44, %v360_v48 }
 0x214   :  { %v368_v47 = vmul.f32 %v417_v44, %v359_v46 }
 0x216   :  { %370 = vadd.xlane.f32.xlu0 %v368_v47 }
 0x21a   :  { %372 = vadd.xlane.f32.xlu0 %v369_v49 }
 0x2a3   :  { %v371_v52 = vpop.xlane.xlu0 %370 }
 0x2a4   :  { %v376_v54 = vadd.f32 %v375_v51, %v371_v52 }
 0x2a6   :  { %v383_v58 = vrot.slane %v376_v54, %v382_v53 }
 0x2a7   :  { %v373_v56 = vpop.xlane.xlu0 %372 }
 0x2a8   :  { %v377_v57 = vadd.f32 %v375_v51, %v373_v56 }
 0x2aa   :  { %v388_v59 = vrot.slane %v377_v57, %v387_v55 }
 0x2ac   :  { %v390_v60 = vsel %vm389_vm5, %v388_v59, %v383_v58 }
 0x2ad   :  { %393 = vst.msk [vmem:[#allocation12] sm:$0x1] %vm392_vm6, %v390_v60 }
 0x2ae   :  { %654 = shalt.err (!%p651_p8)
}
 0x2af   :  { %s655_s1 = scalar_lea.hbm %s854_s9, 16 }
 0x2b0   :  { %p656_p9 = scmp.ne.s32.totalorder %s854_s9, %s655_s1  ;;  %p659_p10 = scmp.lt.u32.totalorder %s655_s1, %s854_s9 }
 0x2b2   :  { %p661_p11 = pnand %p659_p10, %p656_p9 }
 0x2b4   :  { %664 = shalt.err (!%p661_p11)
}
 0x2b5   :  { %403 = dma.vmem_to_hbm [thread:$0]  %s401_s23, 16, %s854_s9, [#allocation6]  }
 0x2b6   :  { %671 = dma.done.wait [#allocation6], 16  }
 0x2b7   :  { %672 = vsyncadd [#allocation6], 4294967280 }
 0x2b8   :  { %407 = vsyncpa [#allocation5], 1 }
 0x2b9   :  { %408 = vsyncpa [#allocation8], 1 }
 0x2ba   :  { %409 = vsyncpa [#allocation11], 1 }
 0x2bb   :  { %410 = vsyncpa [#allocation6], 1 }

</bundles_post_ra>
